<compile_context>
chip_gen: v7x
topology: tpu7x:2x2x1
jax: 0.10.0
libtpu: 0.0.40
codegen_flags: <defaults>
</compile_context>

<pallas_src>
import jax
import jax.numpy as jnp
from jax.experimental import pallas as pl
from jax.experimental.pallas import tpu as pltpu


def _conv_gemm_kernel(p_ref, w_ref, b_ref, o_ref):
    """One M-tile of the im2col GEMM.

    p_ref: (TM, K_pad)        bf16 im2col patch tile
    w_ref: (K_pad, C_out_pad) bf16 weight matrix (shared across grid steps)
    b_ref: (1, C_out_pad)     f32 bias row
    o_ref: (TM, C_out_pad)    f32 lane-dense output tile
    """
    acc = jnp.dot(p_ref[...], w_ref[...], preferred_element_type=jnp.float32)
    o_ref[...] = (acc + b_ref[...]).astype(o_ref.dtype)


def _round_up(v, m):
    return (v + m - 1) // m * m


def conv2d_pallas(x, filters, biases, *, padding=0, stride=1):
    """x: [B, C_in, H, W] (NCHW, like PyTorch). Returns [B, C_out, H_out, W_out]."""
    B, C_in, H, W = x.shape
    C_out, C_in_w, F, F2 = filters.shape
    assert C_in == C_in_w and F == F2
    P, S = padding, stride
    H_out = (H + 2 * P - F) // S + 1
    W_out = (W + 2 * P - F) // S + 1

    LANE, SUB = 128, 8
    K = F * F * C_in
    M = B * H_out * W_out
    K_pad = _round_up(K, LANE)          # lane-dense contraction dim
    C_out_pad = _round_up(C_out, LANE)  # lane-dense output dim
    TM = 128 if M >= 256 else _round_up(M, SUB)
    M_pad = _round_up(M, TM)

    # ---------------- wrapper-side layout plumbing (plain XLA) ----------------
    # NCHW -> NHWC, conv zero-padding, bf16 operands for the MXU.
    x_nhwc = jnp.transpose(x, (0, 2, 3, 1)).astype(jnp.bfloat16)
    x_pad = jnp.pad(x_nhwc, ((0, 0), (P, P), (P, P), (0, 0)))

    # im2col patch matrix, tap order (fh, fw, c) — matches the weight reshape
    # below.  The strided (stride=S) slicing happens here, not in the kernel.
    taps = []
    for fh in range(F):
        for fw in range(F):
            taps.append(jax.lax.slice(
                x_pad,
                (0, fh, fw, 0),
                (B, fh + (H_out - 1) * S + 1, fw + (W_out - 1) * S + 1, C_in),
                (1, S, S, 1)))                       # (B, H_out, W_out, C_in)
    patches = jnp.concatenate(taps, axis=-1).reshape(M, K)
    patches = jnp.pad(patches, ((0, M_pad - M), (0, K_pad - K)))

    # Weights as a (K_pad, C_out_pad) matrix; bias lane-padded, kept in f32.
    w_mat = jnp.transpose(filters, (2, 3, 1, 0)).reshape(K, C_out)
    w_mat = jnp.pad(w_mat, ((0, K_pad - K), (0, C_out_pad - C_out)))
    w_mat = w_mat.astype(jnp.bfloat16)
    b_row = jnp.pad(biases.astype(jnp.float32),
                    (0, C_out_pad - C_out)).reshape(1, C_out_pad)

    # ------------------------------ Pallas GEMM -------------------------------
    out_flat = pl.pallas_call(
        _conv_gemm_kernel,
        out_shape=jax.ShapeDtypeStruct((M_pad, C_out_pad), jnp.float32),
        grid_spec=pltpu.PrefetchScalarGridSpec(
            num_scalar_prefetch=0,
            grid=(M_pad // TM,),
            in_specs=[
                pl.BlockSpec((TM, K_pad), lambda m: (m, 0)),
                pl.BlockSpec((K_pad, C_out_pad), lambda m: (0, 0)),
                pl.BlockSpec((1, C_out_pad), lambda m: (0, 0)),
            ],
            out_specs=pl.BlockSpec((TM, C_out_pad), lambda m: (m, 0)),
        ),
        compiler_params=pltpu.CompilerParams(
            dimension_semantics=("parallel",)),
    )(patches, w_mat, b_row)

    # Un-pad the lane/row padding and return to NCHW.
    out = out_flat[:M, :C_out].reshape(B, H_out, W_out, C_out)
    return jnp.transpose(out, (0, 3, 1, 2)).astype(x.dtype)


if __name__ == "__main__":
    # Module config (deterministic, synthetic): Conv2d(4, 8, 3, padding=1, stride=1)
    B, C_in, H, W = 2, 4, 16, 16
    C_out, F, P, S = 8, 3, 1, 1

    key = jax.random.PRNGKey(0)
    kx, kf, kb = jax.random.split(key, 3)
    x = jax.random.normal(kx, (B, C_in, H, W), jnp.float32)
    filters = jax.random.normal(kf, (C_out, C_in, F, F), jnp.float32)
    biases = jax.random.normal(kb, (C_out,), jnp.float32)

    y = conv2d_pallas(x, filters, biases, padding=P, stride=S)
    y = jax.block_until_ready(y)

    # Reference computed from the same bf16-quantized inputs (the kernel feeds
    # bf16 to the MXU with f32 accumulation), so this isolates kernel math.
    x_q = x.astype(jnp.bfloat16).astype(jnp.float32)
    f_q = filters.astype(jnp.bfloat16).astype(jnp.float32)
    y_ref = jax.lax.conv_general_dilated(
        x_q, f_q, window_strides=(S, S), padding=[(P, P), (P, P)],
        dimension_numbers=("NCHW", "OIHW", "NCHW"),
    ) + biases.reshape(1, -1, 1, 1)

    assert y.shape == (B, C_out, H, W)
    err = float(jnp.max(jnp.abs(y - y_ref)))
    assert jnp.allclose(y, y_ref, atol=2e-3, rtol=2e-3), err

    print("KERNEL_OK")
</pallas_src>

<mosaic_0001>
module attributes {stable_mosaic.version = 11 : i64} {
  func.func @_conv_gemm_kernel(%arg0: i32, %arg1: memref<128x128xbf16, #tpu.memory_space<vmem>>, %arg2: memref<128x128xbf16, #tpu.memory_space<vmem>>, %arg3: memref<1x128xf32, #tpu.memory_space<vmem>>, %arg4: memref<128x128xf32, #tpu.memory_space<vmem>>) attributes {dimension_semantics = [#tpu.dimension_semantics<parallel>], iteration_bounds = array<i64: 4>, scalar_prefetch = 0 : i64, scratch_operands = 0 : i64, tpu.core_type = #tpu.core_type<tc>, window_params = [{transform_indices = @transform_0, window_bounds = array<i64: 128, 128>}, {pipeline_mode = #tpu.pipeline_mode<synchronous>, transform_indices = @transform_1, window_bounds = array<i64: 128, 128>}, {pipeline_mode = #tpu.pipeline_mode<synchronous>, transform_indices = @transform_2, window_bounds = array<i64: 1, 128>}, {transform_indices = @transform_3, window_bounds = array<i64: 128, 128>}]} {
    %c0 = arith.constant 0 : index
    %c0_0 = arith.constant 0 : index
    %0 = vector.load %arg1[%c0, %c0_0] : memref<128x128xbf16, #tpu.memory_space<vmem>>, vector<128x128xbf16>
    %c0_1 = arith.constant 0 : index
    %c0_2 = arith.constant 0 : index
    %1 = vector.load %arg2[%c0_1, %c0_2] : memref<128x128xbf16, #tpu.memory_space<vmem>>, vector<128x128xbf16>
    %cst = arith.constant dense<0.000000e+00> : vector<128x128xf32>
    %2 = tpu.matmul %0, %1, %cst {dimension_numbers = #tpu.dot_dimension_numbers<[1], [0], [0], [1], [0, 0, 1, 1], [], []>} : vector<128x128xbf16>, vector<128x128xbf16>, vector<128x128xf32> -> vector<128x128xf32>
    %c0_3 = arith.constant 0 : index
    %c0_4 = arith.constant 0 : index
    %3 = vector.load %arg3[%c0_3, %c0_4] : memref<1x128xf32, #tpu.memory_space<vmem>>, vector<1x128xf32>
    %4 = vector.broadcast %3 : vector<1x128xf32> to vector<128x128xf32>
    %5 = arith.addf %2, %4 : vector<128x128xf32>
    %c0_5 = arith.constant 0 : index
    %c0_6 = arith.constant 0 : index
    %6 = vector.load %arg4[%c0_5, %c0_6] : memref<128x128xf32, #tpu.memory_space<vmem>>, vector<128x128xf32>
    tpu.vector_store %arg4[%c0_5, %c0_6], %5 {strides = array<i32>} : memref<128x128xf32, #tpu.memory_space<vmem>>, vector<128x128xf32>,
    return
  }
  func.func @transform_0(%arg0: i32) -> (i32, i32) {
    %c0_i32 = arith.constant 0 : i32
    %c0_i32_0 = arith.constant 0 : i32
    return %arg0, %c0_i32 : i32, i32
  }
  func.func @transform_1(%arg0: i32) -> (i32, i32) {
    %c0_i32 = arith.constant 0 : i32
    %c0_i32_0 = arith.constant 0 : i32
    %c0_i32_1 = arith.constant 0 : i32
    return %c0_i32, %c0_i32_0 : i32, i32
  }
  func.func @transform_2(%arg0: i32) -> (i32, i32) {
    %c0_i32 = arith.constant 0 : i32
    %c0_i32_0 = arith.constant 0 : i32
    %c0_i32_1 = arith.constant 0 : i32
    return %c0_i32, %c0_i32_0 : i32, i32
  }
  func.func @transform_3(%arg0: i32) -> (i32, i32) {
    %c0_i32 = arith.constant 0 : i32
    %c0_i32_0 = arith.constant 0 : i32
    return %arg0, %c0_i32 : i32, i32
  }
}

</mosaic_0001>

<bundles_post_ra>
// kernel: tpu_custom_call.1
= control target key start
LH: loop header
LB: loop body
LE: loop exit
PB: predicated region body
PF: predicated region fallthrough
CT: control target
= control target key end

     0   :  { %8 = vsyncpa [#allocation3], 0  ;;  %s1116_s0 = inlined_call_operand.hbm [shape: bf16[512,128], index: 0, kind: input, shape index: {}]   ;;  %s1117_s1 = inlined_call_operand.hbm [shape: bf16[128,128], index: 1, kind: input, shape index: {}]   ;;  %s1118_s2 = inlined_call_operand.vmem [shape: f32[1,128], index: 2, kind: input, shape index: {}]   ;;  %s1119_s3 = inlined_call_operand.hbm [shape: f32[512,128], index: 3, kind: output, shape index: {}]  }
   0x1   :  { %10 = vsyncpa [#allocation3 + $0x1], 0 }
   0x2   :  { %11 = vsyncpa [#allocation6], 0 }
   0x3   :  { %12 = vsyncpa [#allocation4], 0 }
   0x4   :  { %14 = vsyncpa [#allocation4 + $0x1], 0  ;;  %s885_s12 = smov 0   ;;  %s887_s13 = smov 0  }
   0x5   :  { %s889_s14 = smov 0   ;;  %s891_s15 = smov 0  }
   0x6 LB: > { %s906_s16 = sadd.s32 4294967295, %s856_s15   ;;  %s552_s17 = sadd.s32 4294967294, %s856_s15   ;;  %s856_s15 = sphi %s891_s15, %s1138_s15   ;;  %s852_s14 = sphi %s889_s14, %s1137_s14   ;;  %s848_s13 = sphi %s887_s13, %s1136_s13   ;;  %s844_s12 = sphi %s885_s12, %s1135_s12  }
   0x7   : > { %p40_p0 = scmp.ne.s32.totalorder %s848_s13, %s844_s12  ;;  %p1120_p1 = scmp.eq.s32.totalorder %s906_s16, 0 }
   0x8   : > { %p112_p3 = scmp.eq.s32.totalorder %s552_s17, 3  ;;  %p553_p5 = scmp.ge.s32.totalorder %s856_s15, 1 }
   0x9   : > { %p915_p4 = por %p1120_p1, %p40_p0  ;;  %p119_p7 = scmp.lt.s32.totalorder %s856_s15, 5 }
   0xa   : > { %p920_p6 = por %p112_p3, %p40_p0  ;;  %s858_s21 = smov [#allocation5]  }
   0xb   : > { %s1123_s18 = scalar_select %p915_p4, 1, 0 }
   0xc   : > { %s1124_s19 = scalar_select %p920_p6, 1, 0 }
   0xd   : > { %p925_p8 = pnand %p553_p5, %p119_p7  ;;  %s131_s22 = sshll.u32 %s858_s21, 4  ;;  %s132_s22 = int_to_ptr.vmem [resolvable:$true] %s131_s22 }
   0xe   : > { %s938_s24 = sadd.s32 1, %s856_s15   ;;  %s27_s25 = sadd.s32 1, %s852_s14 }
   0xf   : > { %s1125_s20 = scalar_select %p925_p8, 1, 0 }
  0x10   : > { %p659_p9 = pneg %p925_p8  ;;  %s24_s26 = ssub.s32 %s856_s15, %s938_s24 }
  0x11   : > { %s728_s29 = scalar_lea.hbm %s1117_s1, 1024 }
  0x12   : > { %p933_p10 = pnand %p659_p9, %p1120_p1  ;;  %p729_p11 = scmp.ne.s32.totalorder %s1117_s1, %s728_s29 }
  0x13   : > { %p735_p3 = scmp.lt.u32.totalorder %s728_s29, %s1117_s1 }
  0x14   : > { %p730_p12 = pneg %p933_p10 }
  0x16   : > { %p731_p13 = pnand %p730_p12, %p729_p11 }
  0x18   : > { %p732_p0 = pneg %p731_p13 }
  0x1a   : > { %p737_p5 = pnand %p735_p3, %p732_p0 }
  0x1c   : > { %740 = shalt.err (!%p737_p5)
}
  0x1d   : > { %s741_s7 = scalar_lea.vmem %s132_s22, 1024  ;;  %p749_p2 = scmp.lt.s32.totalorder %s132_s22, %s132_s22 }
  0x1e   : > { %p742_p7 = scmp.ne.s32.totalorder %s132_s22, %s741_s7  ;;  %p750_p6 = scmp.lt.s32.totalorder %s741_s7, %s741_s7 }
  0x20   : > { %p744_p9 = pnand %p742_p7, %p730_p12  ;;  %p751_p4 = por %p750_p6, %p749_p2 }
  0x22   : > { %p745_p1 = pneg %p744_p9 }
  0x24   : > { %p752_p8 = pnand %p751_p4, %p745_p1 }
  0x26   : > { %755 = shalt.err (!%p752_p8)
}
  0x27   : > { %s859_s8 = smov 64   ;;  %s860_s9 = smov 4  }
  0x28   : > { %662 = dma.hbm_to_vmem [thread:$0]  (!%p933_p10), %s1117_s1, 1024, %s132_s22, [#allocation6], %s859_s8, %s859_s8, %s860_s9  }
  0x29   : > { %p25_p1 = scmp.eq.s32.totalorder %s24_s26, 0  ;;  %p34_p2 = scmp.ne.s32.totalorder %s852_s14, %s848_s13 }
  0x2a   : > { %p35_p4 = scmp.eq.s32.totalorder %s856_s15, 0  ;;  %p672_p6 = scmp.lt.s32.totalorder %s856_s15, 4 }
  0x2b   : > { %s967_s17 = scalar_select %p25_p1, %s852_s14, %s27_s25  }
  0x2c   : > { %p36_p8 = por %p35_p4, %p34_p2  ;;  %p1127_p11 = scmp.eq.s32.totalorder %s906_s16, 3 }
  0x2d   : > { %s148_s23 = sand.u32 1, %s852_s14   ;;  %s585_s27 = sshll.u32 %s856_s15, 10 }
  0x2e   : > { %p971_p12 = por %p1127_p11, %p34_p2  ;;  %s556_s28 = sshll.u32 %s148_s23, 6 }
  0x2f   : > { %s980_s4 = scalar_lea.hbm %s1116_s0, %s585_s27  ;;  %s152_s22 = scalar_lea.vmem [#allocation2], %s556_s28 }
  0x30   : > { %s159_s25 = sshll.u32 %s152_s22, 4  ;;  %p982_p10 = pnand %p672_p6, %p36_p8  ;;  %s986_s25 = int_to_ptr.vmem [resolvable:$true] %s159_s25 }
  0x31   : > { %s988_s5 = scalar_lea.sflag [#allocation3], %s148_s23  ;;  %s756_s6 = scalar_lea.hbm %s980_s4, 1024 }
  0x32   : > { %p757_p13 = scmp.ne.s32.totalorder %s980_s4, %s756_s6  ;;  %p758_p0 = pneg %p982_p10 }
  0x33   : > { %s761_s11 = scalar_lea.hbm %s1116_s0, 4096  ;;  %p762_p7 = scmp.lt.u32.totalorder %s980_s4, %s1116_s0 }
  0x34   : > { %p759_p3 = pnand %p758_p0, %p757_p13  ;;  %p763_p9 = scmp.lt.u32.totalorder %s761_s11, %s756_s6 }
  0x35   : > { %p765_p2 = scmp.lt.u32.totalorder %s756_s6, %s980_s4 }
  0x36   : > { %p760_p5 = pneg %p759_p3  ;;  %p764_p1 = por %p763_p9, %p762_p7 }
  0x38   : > { %p766_p4 = por %p765_p2, %p764_p1 }
  0x3a   : > { %p767_p6 = pnand %p766_p4, %p760_p5 }
  0x3c   : > { %770 = shalt.err (!%p767_p6)
}
  0x3d   : > { %s771_s23 = scalar_lea.vmem %s986_s25, 1024  ;;  %s861_s29 = smov [#allocation2]  }
  0x3e   : > { %p772_p8 = scmp.ne.s32.totalorder %s986_s25, %s771_s23  ;;  %s776_s30 = sshll.u32 %s861_s29, 4  ;;  %s777_s30 = int_to_ptr.vmem [resolvable:$false] %s776_s30 }
  0x3f   : > { %s778_s22 = scalar_lea.vmem %s777_s30, 2048  ;;  %p779_p3 = scmp.lt.s32.totalorder %s986_s25, %s777_s30 }
  0x40   : > { %p774_p11 = pnand %p772_p8, %p758_p0  ;;  %p780_p7 = scmp.lt.s32.totalorder %s778_s22, %s771_s23 }
  0x42   : > { %p775_p13 = pneg %p774_p11  ;;  %p781_p9 = por %p780_p7, %p779_p3 }
  0x44   : > { %p782_p1 = pnand %p781_p9, %p775_p13 }
  0x46   : > { %785 = shalt.err (!%p782_p1)
}
  0x47   : > { %666 = dma.hbm_to_vmem [thread:$0]  (!%p982_p10), %s980_s4, 1024, %s986_s25, %s988_s5, %s859_s8, %s859_s8, %s860_s9  }
  0x48   : > { %p1130_p0 = scmp.ne.s32.totalorder %s1125_s20, 0 }
  0x49   : > { %s1022_s6 = sand.u32 (!%p1130_p0), 1, %s848_s13   ;;  %p1131_p5 = scmp.ne.s32.totalorder (!%p1130_p0), %s1123_s18, 0 }
  0x4a   : > { %171 = sbr.rel (%p1130_p0) target bundleno = 358 (0x166), region = 32  ;;  %s560_s7 = sshll.u32 (!%p1130_p0), %s1022_s6, 6 }
  0x4b   : > { %s174_s10 = scalar_lea.sflag (!%p1130_p0), [#allocation3], %s1022_s6  ;;  %s1026_s11 = scalar_lea.vmem (!%p1130_p0), [#allocation2], %s560_s7 }
  0x51   : > { %831 = dma.done.wait (%p1131_p5), %s174_s10, 1024  }
  0x52   : > { %833 = vsyncadd (%p1131_p5), %s174_s10, 4294966272  ;;  %p1132_p10 = scmp.eq.s32.totalorder %s906_s16, 0 }
  0x54   : > { %835 = dma.done.wait (%p1132_p10), [#allocation6], 1024   ;;  %p1133_p2 = pmov %p1132_p10 }
  0x55   : > { %v712_v0 = vld [vmem:[#allocation5] sm:$0xff]   ;;  %v713_v1 = vld [vmem:[#allocation5 + $0x8] sm:$0xff]   ;;  %v714_v2 = vld [vmem:[#allocation5 + $0x10] sm:$0xff]   ;;  %s562_s18 = sshll.u32 %s1022_s6, 7  ;;  %s586_s4 = sshll.u32 %s906_s16, 11 }
  0x56   : > { %837 = vsyncadd (%p1133_p2), [#allocation6], 4294966272  ;;  %603 = vmatprep.subr.bf16.mxu0 %v712_v0  ;;  %635 = vmatprep.subr.bf16.mxu1 %v712_v0  ;;  %v715_v3 = vld [vmem:[#allocation5 + $0x18] sm:$0xff]   ;;  %v720_v4 = vld [vmem:[%s1026_s11] sm:$0xff]   ;;  %s1048_s9 = scalar_lea.vmem [#allocation7], %s562_s18  ;;  %s1065_s5 = scalar_lea.hbm %s1119_s3, %s586_s4 }
  0x57   : > { %604 = vmatpush3.bf16.msra.mxu0 %v712_v0  ;;  %643 = vmatpush3.bf16.msra.mxu1 %v712_v0  ;;  %v721_v5 = vld [vmem:[%s1026_s11 + $0x20] sm:$0xff]   ;;  %v717_v7 = vld [vmem:[#allocation5 + $0x28] sm:$0xff]   ;;  %v718_v8 = vld [vmem:[#allocation5 + $0x30] sm:$0xff]   ;;  %s469_s25 = sshll.u32 %s1048_s9, 4  ;;  %s456_s27 = scalar_lea.sflag [#allocation4], %s1022_s6  ;;  %s1067_s25 = int_to_ptr.vmem [resolvable:$true] %s469_s25 }
  0x58   : > { %605 = vmatprep.subr.bf16.mxu0 %v713_v1  ;;  %636 = vmatprep.subr.bf16.mxu1 %v713_v1  ;;  %v716_v6 = vld [vmem:[#allocation5 + $0x20] sm:$0xff]   ;;  %v719_v9 = vld [vmem:[#allocation5 + $0x38] sm:$0xff]   ;;  %v722_v10 = vld [vmem:[%s1026_s11 + $0x8] sm:$0xff]   ;;  %s786_s28 = scalar_lea.vmem %s1067_s25, 2048  ;;  %s862_s23 = smov [#allocation7]  }
  0x59   : > { %619 = vmatprep.mubr.bf16.mxu0 %v720_v4  ;;  %627 = vmatprep.mubr.bf16.mxu1 %v721_v5  ;;  %v723_v11 = vld [vmem:[%s1026_s11 + $0x28] sm:$0xff]   ;;  %v724_v12 = vld [vmem:[%s1026_s11 + $0x10] sm:$0xff]   ;;  %v726_v14 = vld [vmem:[%s1026_s11 + $0x18] sm:$0xff]   ;;  %p787_p4 = scmp.ne.s32.totalorder %s1067_s25, %s786_s28  ;;  %s790_s29 = sshll.u32 %s862_s23, 4  ;;  %s791_s29 = int_to_ptr.vmem [resolvable:$false] %s790_s29 }
  0x5a   : > { %v725_v13 = vld [vmem:[%s1026_s11 + $0x30] sm:$0xff]   ;;  %v727_v15 = vld [vmem:[%s1026_s11 + $0x38] sm:$0xff]   ;;  %v563_v16 = vld [vmem:[%s1118_s2] ss:$0 sm:$0xff]  ;;  %s792_s30 = scalar_lea.vmem %s791_s29, 4096  ;;  %p793_p11 = scmp.lt.s32.totalorder %s1067_s25, %s791_s29 }
  0x5b   : > { %606 = vmatpush3.bf16.msra.mxu0 %v713_v1  ;;  %644 = vmatpush3.bf16.msra.mxu1 %v713_v1  ;;  %p788_p6 = pnand %p787_p4, %p971_p12  ;;  %p794_p13 = scmp.lt.s32.totalorder %s792_s30, %s786_s28 }
  0x5c   : > { %607 = vmatprep.subr.bf16.mxu0 %v714_v2  ;;  %637 = vmatprep.subr.bf16.mxu1 %v714_v2 }
  0x5d   : > { %p789_p8 = pneg %p788_p6  ;;  %p795_p3 = por %p794_p13, %p793_p11 }
  0x5f   : > { %608 = vmatpush3.bf16.msra.mxu0 %v714_v2  ;;  %645 = vmatpush3.bf16.msra.mxu1 %v714_v2  ;;  %p796_p7 = pnand %p795_p3, %p789_p8 }
  0x60   : > { %609 = vmatprep.subr.bf16.mxu0 %v715_v3  ;;  %638 = vmatprep.subr.bf16.mxu1 %v715_v3 }
  0x63   : > { %610 = vmatpush3.bf16.msra.mxu0 %v715_v3  ;;  %646 = vmatpush3.bf16.msra.mxu1 %v715_v3 }
  0x64   : > { %611 = vmatprep.subr.bf16.mxu0 %v716_v6  ;;  %639 = vmatprep.subr.bf16.mxu1 %v716_v6 }
  0x67   : > { %612 = vmatpush3.bf16.msra.mxu0 %v716_v6  ;;  %647 = vmatpush3.bf16.msra.mxu1 %v716_v6 }
  0x68   : > { %613 = vmatprep.subr.bf16.mxu0 %v717_v7  ;;  %640 = vmatprep.subr.bf16.mxu1 %v717_v7 }
  0x6b   : > { %614 = vmatpush3.bf16.msra.mxu0 %v717_v7  ;;  %648 = vmatpush3.bf16.msra.mxu1 %v717_v7 }
  0x6c   : > { %615 = vmatprep.subr.bf16.mxu0 %v718_v8  ;;  %641 = vmatprep.subr.bf16.mxu1 %v718_v8 }
  0x6f   : > { %616 = vmatpush3.bf16.msra.mxu0 %v718_v8  ;;  %649 = vmatpush3.bf16.msra.mxu1 %v718_v8 }
  0x70   : > { %617 = vmatprep.subr.bf16.mxu0 %v719_v9  ;;  %642 = vmatprep.subr.bf16.mxu1 %v719_v9 }
  0x73   : > { %618 = vmatpush3.bf16.msra.mxu0 %v719_v9  ;;  %650 = vmatpush3.bf16.msra.mxu1 %v719_v9 }
  0x76   : > { %620 = vmatmul.mubr.bf16.vlgmr.msra.gmra.mrb[0].mxu0 %v722_v10  ;;  %628 = vmatmul.mubr.bf16.vlgmr.msra.gmra.mrb[0].mxu1 %v723_v11 }
  0x77   : > { %623 = vmatprep.mubr.bf16.mxu0 %v724_v12  ;;  %631 = vmatprep.mubr.bf16.mxu1 %v725_v13 }
  0x7e   : > { %624 = vmatmul.mubr.bf16.gmra.mrb[4].mxu0 %v726_v14  ;;  %632 = vmatmul.mubr.bf16.gmra.mrb[4].mxu1 %v727_v15 }
 0x149   : > { %v621_v17 = vpop.f32.mrb[0].mxu0  ;;  %v629_v18 = vpop.f32.mrb[0].mxu1 }
 0x14a   : > { %v385_v19 = vadd.f32 %v621_v17, %v563_v16  ;;  %v417_v20 = vadd.f32 %v629_v18, %v563_v16  ;;  %v376_v21 = vpop.f32.mrb[1].mxu0  ;;  %v408_v22 = vpop.f32.mrb[1].mxu1 }
 0x14b   : > { %v377_v23 = vadd.f32 %v563_v16, %v376_v21  ;;  %v409_v24 = vadd.f32 %v563_v16, %v408_v22  ;;  %v622_v25 = vpop.f32.mrb[2].mxu0  ;;  %v630_v26 = vpop.f32.mrb[2].mxu1 }
 0x14c   : > { %441 = vst [vmem:[%s1048_s9 + $0x10] sm:$0xff] %v385_v19  ;;  %449 = vst [vmem:[%s1048_s9 + $0x50] sm:$0xff] %v417_v20  ;;  %v388_v27 = vadd.f32 %v622_v25, %v563_v16  ;;  %v420_v28 = vadd.f32 %v630_v26, %v563_v16  ;;  %v379_v29 = vpop.f32.mrb[3].mxu0  ;;  %v411_v30 = vpop.f32.mrb[3].mxu1 }
 0x14d   : > { %439 = vst [vmem:[%s1048_s9] sm:$0xff] %v377_v23  ;;  %447 = vst [vmem:[%s1048_s9 + $0x40] sm:$0xff] %v409_v24  ;;  %v380_v31 = vadd.f32 %v563_v16, %v379_v29  ;;  %v412_v32 = vadd.f32 %v563_v16, %v411_v30 }
 0x14e   : > { %442 = vst [vmem:[%s1048_s9 + $0x18] sm:$0xff] %v388_v27  ;;  %450 = vst [vmem:[%s1048_s9 + $0x58] sm:$0xff] %v420_v28 }
 0x14f   : > { %440 = vst [vmem:[%s1048_s9 + $0x8] sm:$0xff] %v380_v31  ;;  %448 = vst [vmem:[%s1048_s9 + $0x48] sm:$0xff] %v412_v32 }
 0x151   : > { %v625_v33 = vpop.f32.mrb[4].mxu0  ;;  %v633_v34 = vpop.f32.mrb[4].mxu1 }
 0x152   : > { %v401_v35 = vadd.f32 %v625_v33, %v563_v16  ;;  %v433_v36 = vadd.f32 %v633_v34, %v563_v16  ;;  %v392_v37 = vpop.f32.mrb[5].mxu0  ;;  %v424_v38 = vpop.f32.mrb[5].mxu1 }
 0x153   : > { %v393_v39 = vadd.f32 %v563_v16, %v392_v37  ;;  %v425_v40 = vadd.f32 %v563_v16, %v424_v38  ;;  %v626_v41 = vpop.f32.mrb[6].mxu0  ;;  %v634_v42 = vpop.f32.mrb[6].mxu1 }
 0x154   : > { %445 = vst [vmem:[%s1048_s9 + $0x30] sm:$0xff] %v401_v35  ;;  %453 = vst [vmem:[%s1048_s9 + $0x70] sm:$0xff] %v433_v36  ;;  %v404_v43 = vadd.f32 %v626_v41, %v563_v16  ;;  %v436_v44 = vadd.f32 %v634_v42, %v563_v16  ;;  %v395_v45 = vpop.f32.mrb[7].mxu0  ;;  %v427_v46 = vpop.f32.mrb[7].mxu1 }
 0x155   : > { %443 = vst [vmem:[%s1048_s9 + $0x20] sm:$0xff] %v393_v39  ;;  %451 = vst [vmem:[%s1048_s9 + $0x60] sm:$0xff] %v425_v40  ;;  %v396_v47 = vadd.f32 %v563_v16, %v395_v45  ;;  %v428_v48 = vadd.f32 %v563_v16, %v427_v46 }
 0x156   : > { %446 = vst [vmem:[%s1048_s9 + $0x38] sm:$0xff] %v404_v43  ;;  %454 = vst [vmem:[%s1048_s9 + $0x78] sm:$0xff] %v436_v44 }
 0x157   : > { %444 = vst [vmem:[%s1048_s9 + $0x28] sm:$0xff] %v396_v47  ;;  %452 = vst [vmem:[%s1048_s9 + $0x68] sm:$0xff] %v428_v48 }
 0x158   : > { %799 = shalt.err (!%p796_p7)
}
 0x159   : > { %s800_s22 = scalar_lea.hbm %s1065_s5, 2048  ;;  %s804_s11 = scalar_lea.hbm %s1119_s3, 8192 }
 0x15a   : > { %p801_p9 = scmp.ne.s32.totalorder %s1065_s5, %s800_s22  ;;  %p805_p5 = scmp.lt.u32.totalorder %s1065_s5, %s1119_s3 }
 0x15b   : > { %p806_p10 = scmp.lt.u32.totalorder %s804_s11, %s800_s22  ;;  %p808_p4 = scmp.lt.u32.totalorder %s800_s22, %s1065_s5 }
 0x15c   : > { %p802_p1 = pnand %p801_p9, %p971_p12 }
 0x15d   : > { %p807_p2 = por %p806_p10, %p805_p5 }
 0x15e   : > { %p803_p0 = pneg %p802_p1 }
 0x15f   : > { %p809_p6 = por %p808_p4, %p807_p2 }
 0x161   : > { %p810_p8 = pnand %p809_p6, %p803_p0 }
 0x163   : > { %813 = shalt.err (!%p810_p8)
}
 0x164   : > { %s863_s8 = smov 128   ;;  %s864_s9 = smov 8  }
 0x165   : > { %657 = dma.vmem_to_hbm [thread:$0]  (%p971_p12), %s1067_s25, 2048, %s1065_s5, %s456_s27, %s863_s8, %s863_s8, %s864_s9  }
 0x166 PF: > { %p674_p11 = scmp.ge.s32.totalorder %s856_s15, 2  ;;  %s484_s4 = sand.u32 1, %s844_s12  }
 0x167   : > { %p1134_p13 = scmp.ne.s32.totalorder %s1124_s19, 0  ;;  %s485_s16 = scalar_lea.sflag [#allocation4], %s484_s4 }
 0x169   : > { %p668_p3 = pnand %p674_p11, %p1134_p13 }
 0x16b   : > { %839 = dma.done.wait (!%p668_p3), %s485_s16, 2048  }
 0x16c   : > { %841 = vsyncadd (!%p668_p3), %s485_s16, 4294965248  ;;  %p17_p7 = scmp.ge.s32.totalorder %s938_s24, 6   ;;  %s1135_s12 = smov %s848_s13 }
 0x16d   : > { %s1136_s13 = smov %s852_s14  ;;  %s1137_s14 = smov %s967_s17 }
 0x16e   : > { %s1138_s15 = smov %s938_s24  ;;  %19 = sbr.rel (!%p17_p7) target bundleno = 6 (0x6), region = 81 }
 0x175   :  { %490 = vsyncpa [#allocation3], 1 }
 0x176   :  { %492 = vsyncpa [#allocation3 + $0x1], 1 }
 0x177   :  { %493 = vsyncpa [#allocation6], 1 }
 0x178   :  { %494 = vsyncpa [#allocation4], 1 }
 0x179   :  { %496 = vsyncpa [#allocation4 + $0x1], 1 }

</bundles_post_ra>
